<compile_context>
chip_gen: v7x
topology: tpu7x:2x2x1
jax: 0.10.0
libtpu: 0.0.40
codegen_flags: <defaults>
</compile_context>

<pallas_src>
import jax
import jax.numpy as jnp
from jax.experimental import pallas as pl
from jax.experimental.pallas import tpu as pltpu


def _senet_kernel(x_ref, w1t_ref, b1_ref, w2t_ref, b2_ref, o_ref):
    # x_ref block: (NB, HW, C) f32, channels-last (C on lanes, HW on sublanes).
    x = x_ref[...]
    hw = x.shape[1]

    # Squeeze: global average pool over spatial (sublane) axis -> (NB, C).
    pooled = jnp.sum(x, axis=1) * (1.0 / hw)

    # Excitation (batched over NB samples, f32 accumulation on the MXU):
    #   fc1 -> ReLU -> fc2 -> sigmoid
    h = jnp.dot(pooled, w1t_ref[...], preferred_element_type=jnp.float32)  # (NB, Cr)
    h = jnp.maximum(h + b1_ref[...], 0.0)
    s = jnp.dot(h, w2t_ref[...], preferred_element_type=jnp.float32)       # (NB, C)
    s = jax.nn.sigmoid(s + b2_ref[...])

    # Scale: broadcast (NB, 1, C) over the HW sublane axis (lane-dense store).
    o_ref[...] = x * s[:, None, :]


def senet_forward(x, w1, b1, w2, b2, *, batch_block=None):
    """x: (N, C, H, W) f32.  w1: (C//r, C), b1: (C//r,), w2: (C, C//r), b2: (C,)."""
    N, C, H, W = x.shape
    HW = H * W
    Cr = w1.shape[0]

    # Channels-last layout for the kernel (layout plumbing in the wrapper).
    x_cl = jnp.transpose(x.reshape(N, C, HW), (0, 2, 1))  # (N, HW, C)

    # Pre-transpose weights so the excitation is row @ matrix (no in-kernel T).
    w1_t = w1.T                    # (C, Cr)
    w2_t = w2.T                    # (Cr, C)
    b1_row = b1.reshape(1, Cr)
    b2_row = b2.reshape(1, C)

    # Pick NB: target ~1 MiB input blocks, keep >= 2 grid steps (v7x has 2 TCs),
    # and require NB | N so there are no partial blocks.
    bytes_per_sample = HW * C * x.dtype.itemsize
    if batch_block is None:
        target_bytes = 1 << 20
        nb = max(1, min(N, target_bytes // max(bytes_per_sample, 1)))
        while nb > 1 and (N + nb - 1) // nb < 2:
            nb //= 2
        while N % nb != 0:
            nb -= 1
    else:
        nb = batch_block
        assert N % nb == 0, "batch_block must divide N"

    grid = (N // nb,)

    out_cl = pl.pallas_call(
        _senet_kernel,
        out_shape=jax.ShapeDtypeStruct((N, HW, C), x.dtype),
        grid_spec=pltpu.PrefetchScalarGridSpec(
            num_scalar_prefetch=0,
            grid=grid,
            in_specs=[
                pl.BlockSpec((nb, HW, C), lambda n: (n, 0, 0)),  # x (NB samples)
                pl.BlockSpec((C, Cr), lambda n: (0, 0)),         # w1^T (resident)
                pl.BlockSpec((1, Cr), lambda n: (0, 0)),         # b1 row
                pl.BlockSpec((Cr, C), lambda n: (0, 0)),         # w2^T (resident)
                pl.BlockSpec((1, C), lambda n: (0, 0)),          # b2 row
            ],
            out_specs=pl.BlockSpec((nb, HW, C), lambda n: (n, 0, 0)),
        ),
        compiler_params=pltpu.CompilerParams(
            dimension_semantics=("parallel",),
            vmem_limit_bytes=32 * 1024 * 1024,  # safe on v7x (64 MiB physical)
        ),
    )(x_cl, w1_t, b1_row, w2_t, b2_row)

    # Back to NCHW.
    return jnp.transpose(out_cl, (0, 2, 1)).reshape(N, C, H, W)


def senet_reference(x, w1, b1, w2, b2):
    """Pure-JAX reference mirroring the PyTorch forward."""
    pooled = jnp.mean(x, axis=(2, 3))                 # (N, C)
    h = jnp.maximum(pooled @ w1.T + b1, 0.0)          # (N, C//r)
    s = jax.nn.sigmoid(h @ w2.T + b2)                 # (N, C)
    return x * s[:, :, None, None]


if __name__ == "__main__":
    # Module defaults: in_channel=128, r=2. Small spatial size for the test.
    N, C, H, W = 4, 128, 8, 8
    r = 2
    Cr = C // r

    key = jax.random.PRNGKey(0)
    kx, kw1, kb1, kw2, kb2 = jax.random.split(key, 5)

    x = jax.random.normal(kx, (N, C, H, W), dtype=jnp.float32)
    # Deterministic parameter init (uniform, roughly like PyTorch's Linear init scale).
    w1 = jax.random.uniform(kw1, (Cr, C), jnp.float32, -1.0, 1.0) * (1.0 / C) ** 0.5
    b1 = jax.random.uniform(kb1, (Cr,), jnp.float32, -1.0, 1.0) * (1.0 / C) ** 0.5
    w2 = jax.random.uniform(kw2, (C, Cr), jnp.float32, -1.0, 1.0) * (1.0 / Cr) ** 0.5
    b2 = jax.random.uniform(kb2, (C,), jnp.float32, -1.0, 1.0) * (1.0 / Cr) ** 0.5

    out = senet_forward(x, w1, b1, w2, b2)
    out = jax.block_until_ready(out)

    ref = senet_reference(x, w1, b1, w2, b2)
    assert out.shape == (N, C, H, W)
    assert jnp.allclose(out, ref, atol=1e-5, rtol=1e-5), "mismatch vs reference"

    print("KERNEL_OK")
</pallas_src>

<mosaic_0001>
module attributes {stable_mosaic.version = 11 : i64} {
  func.func @_senet_kernel(%arg0: i32, %arg1: memref<2x64x128xf32, #tpu.memory_space<vmem>>, %arg2: memref<128x64xf32, #tpu.memory_space<vmem>>, %arg3: memref<1x64xf32, #tpu.memory_space<vmem>>, %arg4: memref<64x128xf32, #tpu.memory_space<vmem>>, %arg5: memref<1x128xf32, #tpu.memory_space<vmem>>, %arg6: memref<2x64x128xf32, #tpu.memory_space<vmem>>) attributes {dimension_semantics = [#tpu.dimension_semantics<parallel>], iteration_bounds = array<i64: 2>, scalar_prefetch = 0 : i64, scratch_operands = 0 : i64, tpu.core_type = #tpu.core_type<tc>, window_params = [{transform_indices = @transform_0, window_bounds = array<i64: 2, 64, 128>}, {pipeline_mode = #tpu.pipeline_mode<synchronous>, transform_indices = @transform_1, window_bounds = array<i64: 128, 64>}, {pipeline_mode = #tpu.pipeline_mode<synchronous>, transform_indices = @transform_2, window_bounds = array<i64: 1, 64>}, {pipeline_mode = #tpu.pipeline_mode<synchronous>, transform_indices = @transform_3, window_bounds = array<i64: 64, 128>}, {pipeline_mode = #tpu.pipeline_mode<synchronous>, transform_indices = @transform_4, window_bounds = array<i64: 1, 128>}, {transform_indices = @transform_5, window_bounds = array<i64: 2, 64, 128>}]} {
    %c0 = arith.constant 0 : index
    %c0_0 = arith.constant 0 : index
    %c0_1 = arith.constant 0 : index
    %0 = vector.load %arg1[%c0, %c0_0, %c0_1] : memref<2x64x128xf32, #tpu.memory_space<vmem>>, vector<2x64x128xf32>
    %cst = arith.constant dense<0.000000e+00> : vector<2x128xf32>
    %1 = vector.multi_reduction <add>, %0, %cst [1] : vector<2x64x128xf32> to vector<2x128xf32>
    %cst_2 = arith.constant 1.562500e-02 : f32
    %2 = vector.broadcast %cst_2 : f32 to vector<2x128xf32>
    %3 = arith.mulf %1, %2 : vector<2x128xf32>
    %c0_3 = arith.constant 0 : index
    %c0_4 = arith.constant 0 : index
    %4 = vector.load %arg2[%c0_3, %c0_4] : memref<128x64xf32, #tpu.memory_space<vmem>>, vector<128x64xf32>
    %cst_5 = arith.constant dense<0.000000e+00> : vector<2x64xf32>
    %5 = tpu.matmul %3, %4, %cst_5 {dimension_numbers = #tpu.dot_dimension_numbers<[1], [0], [0], [1], [0, 0, 1, 1], [], []>} : vector<2x128xf32>, vector<128x64xf32>, vector<2x64xf32> -> vector<2x64xf32>
    %c0_6 = arith.constant 0 : index
    %c0_7 = arith.constant 0 : index
    %6 = vector.load %arg3[%c0_6, %c0_7] : memref<1x64xf32, #tpu.memory_space<vmem>>, vector<1x64xf32>
    %7 = vector.broadcast %6 : vector<1x64xf32> to vector<2x64xf32>
    %8 = arith.addf %5, %7 : vector<2x64xf32>
    %cst_8 = arith.constant 0.000000e+00 : f32
    %9 = vector.broadcast %cst_8 : f32 to vector<2x64xf32>
    %10 = arith.maximumf %8, %9 : vector<2x64xf32>
    %c0_9 = arith.constant 0 : index
    %c0_10 = arith.constant 0 : index
    %11 = vector.load %arg4[%c0_9, %c0_10] : memref<64x128xf32, #tpu.memory_space<vmem>>, vector<64x128xf32>
    %cst_11 = arith.constant dense<0.000000e+00> : vector<2x128xf32>
    %12 = tpu.matmul %10, %11, %cst_11 {dimension_numbers = #tpu.dot_dimension_numbers<[1], [0], [0], [1], [0, 0, 1, 1], [], []>} : vector<2x64xf32>, vector<64x128xf32>, vector<2x128xf32> -> vector<2x128xf32>
    %c0_12 = arith.constant 0 : index
    %c0_13 = arith.constant 0 : index
    %13 = vector.load %arg5[%c0_12, %c0_13] : memref<1x128xf32, #tpu.memory_space<vmem>>, vector<1x128xf32>
    %14 = vector.broadcast %13 : vector<1x128xf32> to vector<2x128xf32>
    %15 = arith.addf %12, %14 : vector<2x128xf32>
    %16 = arith.negf %15 : vector<2x128xf32>
    %17 = math.exp %16 : vector<2x128xf32>
    %cst_14 = arith.constant 1.000000e+00 : f32
    %18 = vector.broadcast %cst_14 : f32 to vector<2x128xf32>
    %19 = arith.addf %18, %17 : vector<2x128xf32>
    %20 = arith.divf %18, %19 : vector<2x128xf32>
    %21 = vector.shape_cast %20 : vector<2x128xf32> to vector<2x1x128xf32>
    %22 = vector.broadcast %21 : vector<2x1x128xf32> to vector<2x64x128xf32>
    %23 = arith.mulf %0, %22 : vector<2x64x128xf32>
    %c0_15 = arith.constant 0 : index
    %c0_16 = arith.constant 0 : index
    %c0_17 = arith.constant 0 : index
    %24 = vector.load %arg6[%c0_15, %c0_16, %c0_17] : memref<2x64x128xf32, #tpu.memory_space<vmem>>, vector<2x64x128xf32>
    tpu.vector_store %arg6[%c0_15, %c0_16, %c0_17], %23 {strides = array<i32>} : memref<2x64x128xf32, #tpu.memory_space<vmem>>, vector<2x64x128xf32>,
    return
  }
  func.func @transform_0(%arg0: i32) -> (i32, i32, i32) {
    %c0_i32 = arith.constant 0 : i32
    %c0_i32_0 = arith.constant 0 : i32
    %c0_i32_1 = arith.constant 0 : i32
    return %arg0, %c0_i32, %c0_i32_0 : i32, i32, i32
  }
  func.func @transform_1(%arg0: i32) -> (i32, i32) {
    %c0_i32 = arith.constant 0 : i32
    %c0_i32_0 = arith.constant 0 : i32
    %c0_i32_1 = arith.constant 0 : i32
    return %c0_i32, %c0_i32_0 : i32, i32
  }
  func.func @transform_2(%arg0: i32) -> (i32, i32) {
    %c0_i32 = arith.constant 0 : i32
    %c0_i32_0 = arith.constant 0 : i32
    %c0_i32_1 = arith.constant 0 : i32
    return %c0_i32, %c0_i32_0 : i32, i32
  }
  func.func @transform_3(%arg0: i32) -> (i32, i32) {
    %c0_i32 = arith.constant 0 : i32
    %c0_i32_0 = arith.constant 0 : i32
    %c0_i32_1 = arith.constant 0 : i32
    return %c0_i32, %c0_i32_0 : i32, i32
  }
  func.func @transform_4(%arg0: i32) -> (i32, i32) {
    %c0_i32 = arith.constant 0 : i32
    %c0_i32_0 = arith.constant 0 : i32
    %c0_i32_1 = arith.constant 0 : i32
    return %c0_i32, %c0_i32_0 : i32, i32
  }
  func.func @transform_5(%arg0: i32) -> (i32, i32, i32) {
    %c0_i32 = arith.constant 0 : i32
    %c0_i32_0 = arith.constant 0 : i32
    %c0_i32_1 = arith.constant 0 : i32
    return %arg0, %c0_i32, %c0_i32_0 : i32, i32, i32
  }
}

</mosaic_0001>

<bundles_post_ra>
// kernel: tpu_custom_call.1
= control target key start
LH: loop header
LB: loop body
LE: loop exit
PB: predicated region body
PF: predicated region fallthrough
CT: control target
= control target key end

     0   :  { %10 = vsyncpa [#allocation3], 0  ;;  %s1330_s0 = inlined_call_operand.hbm [shape: f32[4,64,128], index: 0, kind: input, shape index: {}]   ;;  %s1331_s1 = inlined_call_operand.vmem [shape: f32[128,64], index: 1, kind: input, shape index: {}]   ;;  %s1332_s2 = inlined_call_operand.vmem [shape: f32[1,64], index: 2, kind: input, shape index: {}]   ;;  %s1333_s3 = inlined_call_operand.vmem [shape: f32[64,128], index: 3, kind: input, shape index: {}]   ;;  %s1334_s4 = inlined_call_operand.vmem [shape: f32[1,128], index: 4, kind: input, shape index: {}]   ;;  %s1335_s5 = inlined_call_operand.hbm [shape: f32[4,64,128], index: 5, kind: output, shape index: {}]  }
   0x1   :  { %12 = vsyncpa [#allocation3 + $0x1], 0 }
   0x2   :  { %13 = vsyncpa [#allocation4], 0 }
   0x3   :  { %15 = vsyncpa [#allocation4 + $0x1], 0  ;;  %s973_s18 = smov 0   ;;  %s975_s19 = smov 0  }
   0x4   :  { %s977_s20 = smov 0   ;;  %s979_s21 = smov 0  }
   0x5 LB: > { %s994_s22 = sadd.s32 4294967295, %s931_s21   ;;  %s637_s23 = sadd.s32 4294967294, %s931_s21   ;;  %s931_s21 = sphi %s979_s21, %s1348_s21   ;;  %s927_s20 = sphi %s977_s20, %s1347_s20   ;;  %s923_s19 = sphi %s975_s19, %s1346_s19   ;;  %s919_s18 = sphi %s973_s18, %s1345_s18  }
   0x6   : > { %s998_s24 = sadd.s32 1, %s931_s21   ;;  %s28_s25 = sadd.s32 1, %s927_s20 }
   0x7   : > { %s25_s26 = ssub.s32 %s931_s21, %s998_s24  ;;  %p35_p0 = scmp.ne.s32.totalorder %s927_s20, %s923_s19 }
   0x8   : > { %p26_p1 = scmp.eq.s32.totalorder %s25_s26, 0  ;;  %p36_p2 = scmp.eq.s32.totalorder %s931_s21, 0 }
   0x9   : > { %p41_p3 = scmp.ne.s32.totalorder %s923_s19, %s919_s18  ;;  %p42_p4 = scmp.eq.s32.totalorder %s994_s22, 0 }
   0xa   : > { %s1010_s27 = scalar_select %p26_p1, %s927_s20, %s28_s25  }
   0xb   : > { %p1012_p5 = por %p36_p2, %p35_p0  ;;  %p1016_p6 = por %p42_p4, %p41_p3 }
   0xc   : > { %p149_p7 = scmp.eq.s32.totalorder %s994_s22, 1  ;;  %p155_p8 = scmp.eq.s32.totalorder %s637_s23, 1 }
   0xd   : > { %p789_p10 = scmp.lt.s32.totalorder %s931_s21, 2  ;;  %s187_s7 = sand.u32 1, %s927_s20  }
   0xe   : > { %p1023_p11 = por %p149_p7, %p35_p0  ;;  %p1027_p12 = por %p155_p8, %p41_p3 }
   0xf   : > { %s658_s8 = sshll.u32 %s931_s21, 11  ;;  %s640_s9 = sshll.u32 %s187_s7, 7 }
  0x10   : > { %s1339_s30 = scalar_select %p1023_p11, 1, 0 }
  0x11   : > { %s1340_s6 = scalar_select %p1027_p12, 1, 0 }
  0x12   : > { %s1036_s12 = scalar_lea.hbm %s1330_s0, %s658_s8  ;;  %s191_s13 = scalar_lea.vmem [#allocation2], %s640_s9 }
  0x13   : > { %s199_s14 = sshll.u32 %s191_s13, 4  ;;  %p1040_p13 = pnand %p789_p10, %p1012_p5  ;;  %s1044_s14 = int_to_ptr.vmem [resolvable:$true] %s199_s14 }
  0x14   : > { %s1046_s16 = scalar_lea.sflag [#allocation3], %s187_s7  ;;  %s835_s17 = scalar_lea.hbm %s1036_s12, 2048 }
  0x15   : > { %p836_p0 = scmp.ne.s32.totalorder %s1036_s12, %s835_s17  ;;  %p837_p1 = pneg %p1040_p13 }
  0x16   : > { %s840_s26 = scalar_lea.hbm %s1330_s0, 4096  ;;  %p841_p4 = scmp.lt.u32.totalorder %s1036_s12, %s1330_s0 }
  0x17   : > { %p838_p2 = pnand %p837_p1, %p836_p0  ;;  %p842_p5 = scmp.lt.u32.totalorder %s840_s26, %s835_s17 }
  0x18   : > { %p844_p8 = scmp.lt.u32.totalorder %s835_s17, %s1036_s12 }
  0x19   : > { %p839_p3 = pneg %p838_p2  ;;  %p843_p7 = por %p842_p5, %p841_p4 }
  0x1b   : > { %p845_p10 = por %p844_p8, %p843_p7 }
  0x1d   : > { %p846_p9 = pnand %p845_p10, %p839_p3 }
  0x1f   : > { %849 = shalt.err (!%p846_p9)
}
  0x20   : > { %s850_s7 = scalar_lea.vmem %s1044_s14, 2048  ;;  %s933_s9 = smov [#allocation2]  }
  0x21   : > { %p851_p0 = scmp.ne.s32.totalorder %s1044_s14, %s850_s7  ;;  %s855_s10 = sshll.u32 %s933_s9, 4  ;;  %s856_s10 = int_to_ptr.vmem [resolvable:$false] %s855_s10 }
  0x22   : > { %s857_s11 = scalar_lea.vmem %s856_s10, 4096  ;;  %p858_p11 = scmp.lt.s32.totalorder %s1044_s14, %s856_s10 }
  0x23   : > { %p853_p2 = pnand %p851_p0, %p837_p1  ;;  %p859_p4 = scmp.lt.s32.totalorder %s857_s11, %s850_s7 }
  0x25   : > { %p854_p12 = pneg %p853_p2  ;;  %p860_p5 = por %p859_p4, %p858_p11 }
  0x27   : > { %p861_p7 = pnand %p860_p5, %p854_p12 }
  0x29   : > { %864 = shalt.err (!%p861_p7)
}
  0x2a   : > { %s934_s13 = smov 128   ;;  %s935_s17 = smov 8  }
  0x2b   : > { %784 = dma.hbm_to_vmem [thread:$0]  (!%p1040_p13), %s1036_s12, 2048, %s1044_s14, %s1046_s16, %s934_s13, %s934_s13, %s935_s17  }
  0x2c   : > { %p644_p9 = scmp.ge.s32.totalorder %s931_s21, 1  ;;  %p207_p1 = scmp.lt.s32.totalorder %s931_s21, 3 }
  0x2e   : > { %p208_p3 = pnand %p644_p9, %p207_p1 }
  0x2f   : > { %s1077_s23 = sand.u32 (!%p208_p3), 1, %s923_s19  }
  0x30   : > { %211 = sbr.rel (%p208_p3) target bundleno = 577 (0x241), region = 40  ;;  %s645_s25 = sshll.u32 (!%p208_p3), %s1077_s23, 7 }
  0x31   : > { %s214_s26 = scalar_lea.sflag (!%p208_p3), [#allocation3], %s1077_s23  ;;  %s1083_s28 = scalar_lea.vmem (!%p208_p3), [#allocation2], %s645_s25 }
  0x37   : > { %910 = dma.done.wait (%p1016_p6), %s214_s26, 2048  }
  0x38   : > { %912 = vsyncadd (%p1016_p6), %s214_s26, 4294965248  ;;  %v936_v0 = vmov 0.0|0.0   ;;  %vm937_vm0 = vmmov 0   ;;  %v938_v1 = vmov 0.0   ;;  %v290_v2 = vld [vmem:[%s1331_s1] sm:$0xff]  ;;  %v291_v3 = vld [vmem:[%s1331_s1 + $0x8] sm:$0xff] }
  0x39   : > { %741 = vmatprep.subr.bf16.mxu0 %v936_v0  ;;  %719 = vmatprep.mubr.msk.f32.mxu0 %vm937_vm0, %v938_v1  ;;  %v292_v4 = vld [vmem:[%s1331_s1 + $0x10] sm:$0xff]  ;;  %v742_v5 = vpack.c.bf16 %v291_v3, %v290_v2  ;;  %v293_v6 = vld [vmem:[%s1331_s1 + $0x18] sm:$0xff]  ;;  %v294_v8 = vld [vmem:[%s1331_s1 + $0x20] sm:$0xff]  ;;  %vm315_vm1 = vcmask 1041409   ;;  %vm404_vm2 = vcmask 523264   ;;  %s660_s26 = sshll.u32 %s994_s22, 11 }
  0x3a   : > { %765 = vmatprep.subr.bf16.mxu1 %v936_v0  ;;  %738 = vmatprep.mubr.msk.f32.mxu1 %vm937_vm0, %v938_v1  ;;  %v745_v7 = vpack.c.bf16 %v293_v6, %v292_v4  ;;  %v295_v9 = vld [vmem:[%s1331_s1 + $0x28] sm:$0xff]  ;;  %v1111_v10 = vld [vmem:[%s1083_s28] sm:$0xff]  ;;  %v1117_v12 = vld [vmem:[%s1083_s28 + $0x10] sm:$0xff]  ;;  %s1249_s12 = scalar_lea.vmem [#allocation5], %s645_s25  ;;  %s1274_s14 = scalar_lea.hbm %s1335_s5, %s660_s26 }
  0x3b   : > { %743 = vmatpush3.bf16.msra.mxu0 %v742_v5  ;;  %v1114_v11 = vld [vmem:[%s1083_s28 + $0x8] sm:$0xff]  ;;  %v748_v14 = vpack.c.bf16 %v295_v9, %v294_v8  ;;  %v296_v15 = vld [vmem:[%s1331_s1 + $0x30] sm:$0xff]  ;;  %v297_v16 = vld [vmem:[%s1331_s1 + $0x38] sm:$0xff]  ;;  %s550_s15 = scalar_lea.sflag [#allocation4], %s1077_s23  ;;  %p1342_p11 = scmp.ne.s32.totalorder %s1339_s30, 0 }
  0x3c   : > { %744 = vmatprep.subr.bf16.mxu0 %v936_v0  ;;  %v262_v13 = vadd.f32 %v1114_v11, %v1111_v10  ;;  %v1128_v17 = vld [vmem:[%s1083_s28 + $0x18] sm:$0xff]  ;;  %v1132_v18 = vld [vmem:[%s1083_s28 + $0x40] sm:$0xff]  ;;  %v1135_v19 = vld [vmem:[%s1083_s28 + $0x48] sm:$0xff]  ;;  %v751_v28 = vpack.c.bf16 %v297_v16, %v296_v15  ;;  %s940_s29 = smov [#allocation5]  }
  0x3d   : > { %v1138_v20 = vld [vmem:[%s1083_s28 + $0x50] sm:$0xff]  ;;  %v1142_v22 = vld [vmem:[%s1083_s28 + $0x20] sm:$0xff]  ;;  %v275_v23 = vadd.f32 %v1135_v19, %v1132_v18  ;;  %v1147_v24 = vld [vmem:[%s1083_s28 + $0x28] sm:$0xff]  ;;  %s869_s8 = sshll.u32 %s940_s29, 4  ;;  %s870_s8 = int_to_ptr.vmem [resolvable:$false] %s869_s8 }
  0x3e   : > { %v263_v21 = vadd.f32 %v262_v13, %v1117_v12  ;;  %v1150_v25 = vld [vmem:[%s1083_s28 + $0x58] sm:$0xff]  ;;  %v389_v27 = vld [vmem:[%s1333_s3] sm:$0xff]  ;;  %v390_v30 = vld [vmem:[%s1333_s3 + $0x8] sm:$0xff]  ;;  %s871_s7 = scalar_lea.vmem %s870_s8, 4096 }
  0x3f   : > { %746 = vmatpush3.bf16.msra.mxu0 %v745_v7  ;;  %v276_v29 = vadd.f32 %v275_v23, %v1138_v20  ;;  %v391_v31 = vld [vmem:[%s1333_s3 + $0x10] sm:$0xff]  ;;  %v392_v32 = vld [vmem:[%s1333_s3 + $0x18] sm:$0xff]  ;;  %v298_v33 = vld [vmem:[%s1331_s1 + $0x40] sm:$0xff]  ;;  %v766_v37 = vpack.c.bf16 %v390_v30, %v389_v27 }
  0x40   : > { %747 = vmatprep.subr.bf16.mxu0 %v936_v0  ;;  %v264_v26 = vadd.f32 %v263_v21, %v1128_v17  ;;  %v299_v34 = vld [vmem:[%s1331_s1 + $0x48] sm:$0xff]  ;;  %v1174_v35 = vld [vmem:[%s1083_s28 + $0x60] sm:$0xff]  ;;  %v1178_v38 = vld [vmem:[%s1083_s28 + $0x30] sm:$0xff]  ;;  %v769_v42 = vpack.c.bf16 %v392_v32, %v391_v31 }
  0x41   : > { %v277_v39 = vadd.f32 %v276_v29, %v1150_v25  ;;  %v1182_v40 = vld [vmem:[%s1083_s28 + $0x68] sm:$0xff]  ;;  %767 = vmatpush3.bf16.msra.mxu1 %v766_v37  ;;  %v754_v43 = vpack.c.bf16 %v299_v34, %v298_v33  ;;  %v1186_v44 = vld [vmem:[%s1083_s28 + $0x38] sm:$0xff]  ;;  %v393_v46 = vld [vmem:[%s1333_s3 + $0x20] sm:$0xff] }
  0x42   : > { %v265_v36 = vadd.f32 %v264_v26, %v1142_v22  ;;  %768 = vmatprep.subr.bf16.mxu1 %v936_v0  ;;  %v394_v47 = vld [vmem:[%s1333_s3 + $0x28] sm:$0xff]  ;;  %v300_v48 = vld [vmem:[%s1331_s1 + $0x50] sm:$0xff]  ;;  %v301_v49 = vld [vmem:[%s1331_s1 + $0x58] sm:$0xff] }
  0x43   : > { %749 = vmatpush3.bf16.msra.mxu0 %v748_v14  ;;  %v278_v45 = vadd.f32 %v277_v39, %v1174_v35  ;;  %v1204_v50 = vld [vmem:[%s1083_s28 + $0x70] sm:$0xff]  ;;  %v1209_v53 = vld [vmem:[%s1083_s28 + $0x78] sm:$0xff]  ;;  %v772_v55 = vpack.c.bf16 %v394_v47, %v393_v46  ;;  %v757_v56 = vpack.c.bf16 %v301_v49, %v300_v48  ;;  %v302_v58 = vld [vmem:[%s1331_s1 + $0x60] sm:$0xff]  ;;  %v488_v47 = vlaneseq  ;;  %s564_s28 = sshll.u32 %s1249_s12, 4  ;;  %s1276_s28 = int_to_ptr.vmem [resolvable:$true] %s564_s28 }
  0x44   : > { %750 = vmatprep.subr.bf16.mxu0 %v936_v0  ;;  %v266_v41 = vadd.f32 %v265_v36, %v1147_v24  ;;  %v303_v59 = vld [vmem:[%s1331_s1 + $0x68] sm:$0xff]  ;;  %v304_v2 = vld [vmem:[%s1331_s1 + $0x70] sm:$0xff]  ;;  %v305_v3 = vld [vmem:[%s1331_s1 + $0x78] sm:$0xff]  ;;  %s865_s16 = scalar_lea.vmem %s1276_s28, 2048  ;;  %p872_p8 = scmp.lt.s32.totalorder %s1276_s28, %s870_s8 }
  0x45   : > { %v279_v52 = vadd.f32 %v278_v45, %v1182_v40  ;;  %770 = vmatpush3.bf16.msra.mxu1 %v769_v42  ;;  %v760_v63 = vpack.c.bf16 %v303_v59, %v302_v58  ;;  %v763_v7 = vpack.c.bf16 %v305_v3, %v304_v2  ;;  %v395_v27 = vld [vmem:[%s1333_s3 + $0x30] sm:$0xff]  ;;  %v647_v29 = vld [vmem:[%s1332_s2] ss:$0 sm:$0xff]  ;;  %v939_v45 = vmov 1966171168   ;;  %p866_p6 = scmp.ne.s32.totalorder %s1276_s28, %s865_s16  ;;  %p873_p10 = scmp.lt.s32.totalorder %s871_s7, %s865_s16 }
  0x46   : > { %v267_v51 = vadd.f32 %v266_v41, %v1178_v38  ;;  %771 = vmatprep.subr.bf16.mxu1 %v936_v0  ;;  %v648_v34 = vld [vmem:[%s1334_s4] ss:$0 sm:$0xff]  ;;  %v486_v46 = vunpack.c.l.s4 %v939_v45  ;;  %v489_v49 = vshrl.u32 %v488_v47, 7 }
  0x47   : > { %752 = vmatpush3.bf16.msra.mxu0 %v751_v28  ;;  %v280_v57 = vadd.f32 %v279_v52, %v1204_v50  ;;  %v396_v28 = vld [vmem:[%s1333_s3 + $0x38] sm:$0xff]  ;;  %p867_p12 = pnand %p866_p6, %p1342_p11  ;;  %p874_p0 = por %p873_p10, %p872_p8 }
  0x48   : > { %753 = vmatprep.subr.bf16.mxu0 %v936_v0  ;;  %v268_v54 = vadd.f32 %v267_v51, %v1186_v44  ;;  %v487_v48 = vunpack.c.0.s8 %v486_v46 }
  0x49   : > { %v281_v61 = vadd.f32 %v280_v57, %v1209_v53  ;;  %773 = vmatpush3.bf16.msra.mxu1 %v772_v55  ;;  %v509_v55 = vsub.s32 0, %v489_v49  ;;  %p868_p13 = pneg %p867_p12 }
  0x4a   : > { %v269_v60 = vrot.slane %v268_v54, 4  ;;  %774 = vmatprep.subr.bf16.mxu1 %v936_v0  ;;  %v490_v51 = vsub.s32 %v487_v48, %v489_v49 }
  0x4b   : > { %755 = vmatpush3.bf16.msra.mxu0 %v754_v43  ;;  %v282_v1 = vrot.slane %v281_v61, 4  ;;  %p875_p2 = pnand %p874_p0, %p868_p13 }
  0x4c   : > { %756 = vmatprep.subr.bf16.mxu0 %v936_v0  ;;  %v270_v62 = vadd.f32 %v269_v60, %v268_v54 }
  0x4d   : > { %v283_v5 = vadd.f32 %v282_v1, %v281_v61 }
  0x4e   : > { %v271_v4 = vrot.slane %v270_v62, 2 }
  0x4f   : > { %758 = vmatpush3.bf16.msra.mxu0 %v757_v56  ;;  %v284_v8 = vrot.slane %v283_v5, 2 }
  0x50   : > { %759 = vmatprep.subr.bf16.mxu0 %v936_v0  ;;  %v272_v6 = vadd.f32 %v271_v4, %v270_v62 }
  0x51   : > { %v285_v13 = vadd.f32 %v284_v8, %v283_v5 }
  0x52   : > { %v273_v9 = vrot.slane %v272_v6, 1 }
  0x53   : > { %761 = vmatpush3.bf16.msra.mxu0 %v760_v63  ;;  %v286_v15 = vrot.slane %v285_v13, 1 }
  0x54   : > { %762 = vmatprep.subr.bf16.mxu0 %v936_v0  ;;  %v274_v14 = vadd.f32 %v273_v9, %v272_v6  ;;  %v775_v0 = vpack.c.bf16 %v396_v28, %v395_v27 }
  0x55   : > { %v287_v16 = vadd.f32 %v286_v15, %v285_v13 }
  0x56   : > { %v288_v21 = vmul.f32 0.015625, %v274_v14  ;;  %776 = vmatpush3.bf16.msra.mxu1 %v775_v0 }
  0x57   : > { %764 = vmatpush3.bf16.msra.mxu0 %v763_v7  ;;  %v289_v23 = vmul.f32 0.015625, %v287_v16 }
  0x59   : > { %v316_v26 = vsel %vm315_vm1, %v289_v23, %v288_v21 }
  0x5a   : > { %720 = vmatmul.mubr.f32.vlgmr.msra.gmra.mrb[0].mxu0 %v316_v26 }
 0x12d   : > { %v384_v30 = vpop.f32.mrb[0].mxu0 }
 0x12e   : > { %v385_v31 = vadd.f32 %v647_v29, %v384_v30  ;;  %v721_v32 = vpop.f32.mrb[1].mxu0 }
 0x130   : > { %v388_v33 = vmax.f32 %v385_v31, 0.0 }
 0x132   : > { %739 = vmatmul.mubr.msk.f32.vlgmr.msra.gmra.mrb[0].mxu1 %vm404_vm2, %v388_v33 }
 0x205   : > { %v474_v36 = vpop.f32.mrb[0].mxu1 }
 0x206   : > { %v475_v37 = vadd.f32 %v648_v34, %v474_v36  ;;  %v740_v39 = vpop.f32.mrb[1].mxu1 }
 0x208   : > { %v650_v41 = vmul.f32 -1.442695, %v475_v37 }
 0x20a   : > { %831 = vpow2.f32 %v650_v41 }
 0x214   : > { %v832_v42 = vpop.eup %831 }
 0x215   : > { %v481_v43 = vadd.f32 1.0, %v832_v42 }
 0x217   : > { %833 = vrcp.f32 %v481_v43 }
 0x221   : > { %v834_v52 = vpop.eup %833 }
 0x222   : > { %v491_v54 = vrot.slane %v834_v52, %v490_v51 }
 0x224   : > { %v492_v56 = vcombine.high %v491_v54, %v491_v54  ;;  %v499_v57 = vrot.slane %v491_v54, %v490_v51 }
 0x226   : > { %v506_v58 = vrot.slane %v492_v56, %v490_v51  ;;  %v510_v59 = vrot.slane %v499_v57, %v509_v55 }
 0x228   : > { %v514_v60 = vrot.slane %v506_v58, %v509_v55  ;;  %v517_v61 = vmul.f32 %v510_v59, %v1111_v10  ;;  %v518_v62 = vmul.f32 %v510_v59, %v1114_v11  ;;  %v519_v63 = vmul.f32 %v510_v59, %v1117_v12 }
 0x229   : > { %v520_v1 = vmul.f32 %v510_v59, %v1128_v17  ;;  %v521_v2 = vmul.f32 %v510_v59, %v1142_v22  ;;  %v522_v10 = vmul.f32 %v510_v59, %v1147_v24  ;;  %v523_v11 = vmul.f32 %v510_v59, %v1178_v38 }
 0x22a   : > { %v524_v12 = vmul.f32 %v510_v59, %v1186_v44  ;;  %v525_v3 = vmul.f32 %v514_v60, %v1132_v18  ;;  %v526_v4 = vmul.f32 %v514_v60, %v1135_v19  ;;  %v527_v5 = vmul.f32 %v514_v60, %v1138_v20  ;;  %533 = vst [vmem:[%s1249_s12] sm:$0xff] %v517_v61 }
 0x22b   : > { %534 = vst [vmem:[%s1249_s12 + $0x8] sm:$0xff] %v518_v62  ;;  %535 = vst [vmem:[%s1249_s12 + $0x10] sm:$0xff] %v519_v63  ;;  %v528_v17 = vmul.f32 %v514_v60, %v1150_v25  ;;  %v529_v22 = vmul.f32 %v514_v60, %v1174_v35  ;;  %v530_v18 = vmul.f32 %v514_v60, %v1182_v40 }
 0x22c   : > { %v531_v19 = vmul.f32 %v514_v60, %v1204_v50  ;;  %536 = vst [vmem:[%s1249_s12 + $0x18] sm:$0xff] %v520_v1  ;;  %537 = vst [vmem:[%s1249_s12 + $0x20] sm:$0xff] %v521_v2  ;;  %v532_v20 = vmul.f32 %v514_v60, %v1209_v53 }
 0x22d   : > { %538 = vst [vmem:[%s1249_s12 + $0x28] sm:$0xff] %v522_v10  ;;  %539 = vst [vmem:[%s1249_s12 + $0x30] sm:$0xff] %v523_v11 }
 0x22e   : > { %540 = vst [vmem:[%s1249_s12 + $0x38] sm:$0xff] %v524_v12  ;;  %541 = vst [vmem:[%s1249_s12 + $0x40] sm:$0xff] %v525_v3 }
 0x22f   : > { %542 = vst [vmem:[%s1249_s12 + $0x48] sm:$0xff] %v526_v4  ;;  %543 = vst [vmem:[%s1249_s12 + $0x50] sm:$0xff] %v527_v5 }
 0x230   : > { %544 = vst [vmem:[%s1249_s12 + $0x58] sm:$0xff] %v528_v17  ;;  %545 = vst [vmem:[%s1249_s12 + $0x60] sm:$0xff] %v529_v22 }
 0x231   : > { %546 = vst [vmem:[%s1249_s12 + $0x68] sm:$0xff] %v530_v18  ;;  %547 = vst [vmem:[%s1249_s12 + $0x70] sm:$0xff] %v531_v19 }
 0x232   : > { %548 = vst [vmem:[%s1249_s12 + $0x78] sm:$0xff] %v532_v20 }
 0x233   : > { %878 = shalt.err (!%p875_p2)
}
 0x234   : > { %s879_s9 = scalar_lea.hbm %s1274_s14, 2048  ;;  %s883_s13 = scalar_lea.hbm %s1335_s5, 4096 }
 0x235   : > { %p880_p4 = scmp.ne.s32.totalorder %s1274_s14, %s879_s9  ;;  %p884_p9 = scmp.lt.u32.totalorder %s1274_s14, %s1335_s5 }
 0x236   : > { %p885_p1 = scmp.lt.u32.totalorder %s883_s13, %s879_s9  ;;  %p887_p6 = scmp.lt.u32.totalorder %s879_s9, %s1274_s14 }
 0x237   : > { %p881_p5 = pnand %p880_p4, %p1342_p11 }
 0x238   : > { %p886_p3 = por %p885_p1, %p884_p9 }
 0x239   : > { %p882_p7 = pneg %p881_p5 }
 0x23a   : > { %p888_p12 = por %p887_p6, %p886_p3 }
 0x23c   : > { %p889_p13 = pnand %p888_p12, %p882_p7 }
 0x23e   : > { %892 = shalt.err (!%p889_p13)
}
 0x23f   : > { %s941_s12 = smov 128   ;;  %s942_s22 = smov 8  }
 0x240   : > { %779 = dma.vmem_to_hbm [thread:$0]  (%p1342_p11), %s1276_s28, 2048, %s1274_s14, %s550_s15, %s941_s12, %s941_s12, %s942_s22  }
 0x241 PF: > { %s579_s25 = sand.u32 1, %s919_s18   ;;  %p1343_p8 = scmp.ne.s32.totalorder %s1340_s6, 0 }
 0x242   : > { %p1344_p10 = scmp.ge.s32.totalorder %s931_s21, 2  ;;  %s580_s16 = scalar_lea.sflag [#allocation4], %s579_s25 }
 0x244   : > { %p786_p0 = pnand %p1344_p10, %p1343_p8 }
 0x246   : > { %914 = dma.done.wait (!%p786_p0), %s580_s16, 2048  }
 0x247   : > { %916 = vsyncadd (!%p786_p0), %s580_s16, 4294965248  ;;  %p18_p2 = scmp.ge.s32.totalorder %s998_s24, 4   ;;  %s1345_s18 = smov %s923_s19 }
 0x248   : > { %s1346_s19 = smov %s927_s20  ;;  %s1347_s20 = smov %s1010_s27 }
 0x249   : > { %s1348_s21 = smov %s998_s24  ;;  %20 = sbr.rel (!%p18_p2) target bundleno = 5 (0x5), region = 85 }
 0x250   :  { %585 = vsyncpa [#allocation3], 1 }
 0x251   :  { %587 = vsyncpa [#allocation3 + $0x1], 1 }
 0x252   :  { %588 = vsyncpa [#allocation4], 1 }
 0x253   :  { %590 = vsyncpa [#allocation4 + $0x1], 1 }

</bundles_post_ra>
